<compile_context>
chip_gen: v6e
topology: v6e:2x2x1
jax: 0.10.0
libtpu: 0.0.40
codegen_flags: <defaults>
</compile_context>

<pallas_src>
import functools

import jax
import jax.numpy as jnp
import numpy as np
from jax.experimental import pallas as pl
from jax.experimental.pallas import tpu as pltpu

MXU_DTYPE = jnp.bfloat16  # MXU operands; accumulation & epilogues stay f32.


def _default_vmem_limit():
    try:
        info = pltpu.get_tpu_info()
        cap = int(getattr(info, "vmem_capacity_bytes", 64 * 1024 * 1024))
    except Exception:
        cap = 64 * 1024 * 1024
    # 3/4 of physical, clamped to [32 MiB, 100 MiB] -> ~96 MiB v5e/v6e, ~48 MiB v7x.
    return int(min(max(cap * 3 // 4, 32 * 1024 * 1024), 100 * 1024 * 1024))


VMEM_LIMIT = _default_vmem_limit()


def _mosaic_params(*sems):
    return pltpu.CompilerParams(dimension_semantics=tuple(sems),
                                vmem_limit_bytes=VMEM_LIMIT)


# ----------------------------------------------------------------------------
# In-kernel helpers
# ----------------------------------------------------------------------------
def _fill_padded(xpad_ref, x_ref, pad):
    """Zero-pad x_ref (H, W, C) into xpad_ref (H+2p, W+2p, C) fully in VMEM."""
    H, W = x_ref.shape[0], x_ref.shape[1]
    xpad_ref[...] = jnp.zeros_like(xpad_ref)
    xpad_ref[pad:pad + H, pad:pad + W, :] = x_ref[...]


def _conv_accumulate(xpad_ref, w_ref, kh, kw, Ho, Wo):
    """3x3 (or kxk) conv as matmuls.  Small K -> one im2col matmul; large K ->
    per-tap (K=Cin) matmuls accumulated in f32 (no wide bf16 intermediate)."""
    cin = xpad_ref.shape[-1]
    kflat = kh * kw * cin
    if kflat <= 128:
        taps = []
        for dy in range(kh):
            for dx in range(kw):
                taps.append(xpad_ref[dy:dy + Ho, dx:dx + Wo, :]
                            .reshape(Ho * Wo, cin).astype(MXU_DTYPE))
        lhs = taps[0] if len(taps) == 1 else jnp.concatenate(taps, axis=-1)
        return jnp.dot(lhs, w_ref[...], preferred_element_type=jnp.float32)
    acc = None
    for dy in range(kh):
        for dx in range(kw):
            t = dy * kw + dx
            lhs = (xpad_ref[dy:dy + Ho, dx:dx + Wo, :]
                   .reshape(Ho * Wo, cin).astype(MXU_DTYPE))
            w_tap = w_ref[t * cin:(t + 1) * cin, :]
            prod = jnp.dot(lhs, w_tap, preferred_element_type=jnp.float32)
            acc = prod if acc is None else acc + prod
    return acc


# ----------------------------------------------------------------------------
# Illumination: 1x1 LED-mixing (VPU, f32) + Hardtanh + batch min/max bookkeeping
# ----------------------------------------------------------------------------
def _illum_kernel(x_ref, w_ref, b_ref, o_ref, mn_ref, mx_ref):
    H, W, L = x_ref.shape
    C = o_ref.shape[-1]
    xv = x_ref[...].reshape(H * W, L)                      # f32, L on lanes
    cols = [jnp.sum(xv * w_ref[c, :], axis=-1, keepdims=True) for c in range(C)]
    acc = cols[0] if C == 1 else jnp.concatenate(cols, axis=-1)   # (H*W, C)
    acc = acc + b_ref[...]

    # batch-wide min/max of the PRE-clip illuminated image (reference bookkeeping),
    # accumulated on-device across the batch grid axis (no host sync).
    tmin = jnp.min(jnp.min(acc, axis=-1, keepdims=True), axis=0, keepdims=True)
    tmax = jnp.max(jnp.max(acc, axis=-1, keepdims=True), axis=0, keepdims=True)

    @pl.when(pl.program_id(0) == 0)
    def _():
        mn_ref[...] = tmin
        mx_ref[...] = tmax

    @pl.when(pl.program_id(0) > 0)
    def _():
        mn_ref[...] = jnp.minimum(mn_ref[...], tmin)
        mx_ref[...] = jnp.maximum(mx_ref[...], tmax)

    # DetectorNoise(0.0) == identity; Hardtanh(-1, 1) fused here (f32 throughout).
    o_ref[...] = jnp.clip(acc, -1.0, 1.0).reshape(H, W, C).astype(o_ref.dtype)


def illumination_pallas(x, w, b):
    """x: (N, H, W, L); w: (C, L) f32; b: (1, C) -> (illum, batch_min, batch_max)."""
    N, H, W, L = x.shape
    C = w.shape[0]
    return pl.pallas_call(
        _illum_kernel,
        out_shape=(jax.ShapeDtypeStruct((N, H, W, C), jnp.float32),
                   jax.ShapeDtypeStruct((1, 1), jnp.float32),
                   jax.ShapeDtypeStruct((1, 1), jnp.float32)),
        grid=(N,),
        in_specs=[
            pl.BlockSpec((None, H, W, L), lambda n: (n, 0, 0, 0)),
            pl.BlockSpec((C, L), lambda n: (0, 0)),
            pl.BlockSpec((1, C), lambda n: (0, 0)),
        ],
        out_specs=(
            pl.BlockSpec((None, H, W, C), lambda n: (n, 0, 0, 0)),
            pl.BlockSpec((1, 1), lambda n: (0, 0)),
            pl.BlockSpec((1, 1), lambda n: (0, 0)),
        ),
        compiler_params=_mosaic_params("arbitrary"),
    )(x, w, b)


# ----------------------------------------------------------------------------
# Generic multi-head 3x3 conv (in-kernel padding, bf16 weights, f32 accumulate)
# ----------------------------------------------------------------------------
def _conv_kernel(x_ref, w_ref, b_ref, o_ref, xpad_ref, *, kh, kw, pad, relu):
    Ho, Wo, cout = o_ref.shape
    _fill_padded(xpad_ref, x_ref, pad)
    acc = _conv_accumulate(xpad_ref, w_ref, kh, kw, Ho, Wo) + b_ref[...]
    if relu:
        acc = jnp.maximum(acc, 0.0)
    o_ref[...] = acc.reshape(Ho, Wo, cout).astype(o_ref.dtype)


def conv2d_pallas(x, w, b, *, batch, kh, kw, padding, relu, shared_input=False):
    """All heads in one pallas_call.

    x: (batch, H, W, Cin) if shared_input else (num_heads*batch, H, W, Cin)  [UNPADDED]
    w: (num_heads, kh*kw*Cin, Cout) bf16;  b: (num_heads, 1, Cout) f32
    returns: (num_heads*batch, Ho, Wo, Cout) f32, head-major leading dim.
    """
    num_heads, kflat, cout = w.shape
    _, H, W, cin = x.shape
    assert kflat == kh * kw * cin
    Ho = H + 2 * padding - kh + 1
    Wo = W + 2 * padding - kw + 1
    kernel = functools.partial(_conv_kernel, kh=kh, kw=kw, pad=padding, relu=relu)

    if shared_input:
        # batch outer / heads inner: the shared image block index is constant
        # across the inner axis, so it is DMA'd once per batch element.
        grid = (batch, num_heads)
        x_idx = lambda n, h: (n, 0, 0, 0)
        w_idx = lambda n, h: (h, 0, 0)
        o_idx = lambda n, h, N=batch: (h * N + n, 0, 0, 0)
    else:
        grid = (num_heads, batch)
        x_idx = lambda h, n, N=batch: (h * N + n, 0, 0, 0)
        w_idx = lambda h, n: (h, 0, 0)
        o_idx = x_idx

    return pl.pallas_call(
        kernel,
        out_shape=jax.ShapeDtypeStruct((num_heads * batch, Ho, Wo, cout), jnp.float32),
        grid=grid,
        in_specs=[
            pl.BlockSpec((None, H, W, cin), x_idx),
            pl.BlockSpec((None, kflat, cout), w_idx),
            pl.BlockSpec((None, 1, cout), w_idx),
        ],
        out_specs=pl.BlockSpec((None, Ho, Wo, cout), o_idx),
        scratch_shapes=[pltpu.VMEM((H + 2 * padding, W + 2 * padding, cin),
                                   jnp.float32)],
        compiler_params=_mosaic_params("parallel", "parallel"),
    )(x, w, b)


# ----------------------------------------------------------------------------
# Decoder conv with skip concat folded in: conv(cat([u, e])) = conv(u) + conv(e)
# ----------------------------------------------------------------------------
def _upconcat_conv_kernel(u_ref, e_ref, wu_ref, we_ref, b_ref, o_ref,
                          upad_ref, epad_ref, *, pad, relu):
    Ho, Wo, cout = o_ref.shape
    _fill_padded(upad_ref, u_ref, pad)
    _fill_padded(epad_ref, e_ref, pad)
    acc = (_conv_accumulate(upad_ref, wu_ref, 3, 3, Ho, Wo)
           + _conv_accumulate(epad_ref, we_ref, 3, 3, Ho, Wo)
           + b_ref[...])
    if relu:
        acc = jnp.maximum(acc, 0.0)
    o_ref[...] = acc.reshape(Ho, Wo, cout).astype(o_ref.dtype)


def upconcat_conv_pallas(u, e, wu, we, b, *, batch, padding, relu):
    num_heads, kflat_u, cout = wu.shape
    kflat_e = we.shape[1]
    _, H, W, cu = u.shape
    ce = e.shape[-1]
    Ho = H + 2 * padding - 2
    Wo = W + 2 * padding - 2
    idx = lambda h, n, N=batch: (h * N + n, 0, 0, 0)
    w_idx = lambda h, n: (h, 0, 0)
    kernel = functools.partial(_upconcat_conv_kernel, pad=padding, relu=relu)
    return pl.pallas_call(
        kernel,
        out_shape=jax.ShapeDtypeStruct((num_heads * batch, Ho, Wo, cout), jnp.float32),
        grid=(num_heads, batch),
        in_specs=[
            pl.BlockSpec((None, H, W, cu), idx),
            pl.BlockSpec((None, H, W, ce), idx),
            pl.BlockSpec((None, kflat_u, cout), w_idx),
            pl.BlockSpec((None, kflat_e, cout), w_idx),
            pl.BlockSpec((None, 1, cout), w_idx),
        ],
        out_specs=pl.BlockSpec((None, Ho, Wo, cout), idx),
        scratch_shapes=[
            pltpu.VMEM((H + 2 * padding, W + 2 * padding, cu), jnp.float32),
            pltpu.VMEM((H + 2 * padding, W + 2 * padding, ce), jnp.float32),
        ],
        compiler_params=_mosaic_params("parallel", "parallel"),
    )(u, e, wu, we, b)


# ----------------------------------------------------------------------------
# Last decoder conv (3x3 + ReLU) fused with the final 1x1 head conv.
# The 1x1 conv is a VPU weighted sum over F channels; the output is stored as a
# LANE-DENSE (H, W) slab (W on lanes) -- no last-dim-1 masked stores.
# ----------------------------------------------------------------------------
def _conv_head_out_kernel(x_ref, w1_ref, b1_ref, wo_ref, bo_ref, o_ref,
                          xpad_ref, *, pad):
    Ho, Wo = o_ref.shape
    _fill_padded(xpad_ref, x_ref, pad)
    hidden = _conv_accumulate(xpad_ref, w1_ref, 3, 3, Ho, Wo) + b1_ref[...]
    hidden = jnp.maximum(hidden, 0.0)                      # (Ho*Wo, F) f32
    F = hidden.shape[-1]
    hidden3 = hidden.reshape(Ho, Wo, F)
    out2d = jnp.sum(hidden3 * wo_ref[...], axis=-1) + bo_ref[...]   # (Ho, Wo) f32
    o_ref[...] = out2d.astype(o_ref.dtype)


def conv_out_pallas(x, w1, b1, w_out, b_out, *, batch, padding):
    num_heads, kflat, f = w1.shape
    _, H, W, cin = x.shape
    Ho = H + 2 * padding - 2
    Wo = W + 2 * padding - 2
    idx4 = lambda h, n, N=batch: (h * N + n, 0, 0, 0)
    idx3 = lambda h, n, N=batch: (h * N + n, 0, 0)
    w_idx = lambda h, n: (h, 0, 0)
    kernel = functools.partial(_conv_head_out_kernel, pad=padding)
    return pl.pallas_call(
        kernel,
        out_shape=jax.ShapeDtypeStruct((num_heads * batch, Ho, Wo), jnp.float32),
        grid=(num_heads, batch),
        in_specs=[
            pl.BlockSpec((None, H, W, cin), idx4),
            pl.BlockSpec((None, kflat, f), w_idx),
            pl.BlockSpec((None, 1, f), w_idx),
            pl.BlockSpec((None, 1, f), w_idx),
            pl.BlockSpec((None, 1, 1), w_idx),
        ],
        out_specs=pl.BlockSpec((None, Ho, Wo), idx3),
        scratch_shapes=[pltpu.VMEM((H + 2 * padding, W + 2 * padding, cin),
                                   jnp.float32)],
        compiler_params=_mosaic_params("parallel", "parallel"),
    )(x, w1, b1, w_out, b_out)


# ----------------------------------------------------------------------------
# Tiny glue ops kept in plain JAX (see TODOs at top for fusing these).
# ----------------------------------------------------------------------------
def maxpool2(x):  # (NB, H, W, C) -> (NB, H//2, W//2, C), even H/W assumed
    NB, H, W, C = x.shape
    return jnp.max(x.reshape(NB, H // 2, 2, W // 2, 2, C), axis=(2, 4))


def upsample2(x):  # nearest-neighbor 2x
    return jnp.repeat(jnp.repeat(x, 2, axis=1), 2, axis=2)


# ----------------------------------------------------------------------------
# Parameter init (deterministic; flat per-head weights, pre-cast to bf16)
# ----------------------------------------------------------------------------
def _init_flat_conv(key, kh, kw, cin, cout, num_heads, fan_in=None):
    fan_in = fan_in if fan_in is not None else kh * kw * cin
    w = jax.random.normal(key, (num_heads, kh * kw * cin, cout), jnp.float32)
    w = (w * (1.0 / np.sqrt(fan_in))).astype(MXU_DTYPE)   # pre-cast once at init
    b = jnp.zeros((num_heads, 1, cout), jnp.float32)
    return w, b


# ----------------------------------------------------------------------------
# Model wrapper (mirrors the PyTorch Model: task='hela', skip=False, noise=0.0)
# ----------------------------------------------------------------------------
class PallasModel:
    def __init__(self, num_heads, num_leds, num_channels=1, num_filters=16,
                 noise=0.0, seed=0):
        self.num_heads = num_heads
        self.noise = noise
        # NOTE: python-list bookkeeping is a side effect -- only valid when the
        # forward pass is called eagerly (not wrapped in jax.jit).
        self.batch_mins = []
        self.batch_maxs = []
        F = num_filters
        NH = num_heads
        key = jax.random.PRNGKey(seed)
        ks = jax.random.split(key, 9)

        # IlluminationLayer: bias-free 1x1 LED-mixing conv, non-negative weights.
        # Stored (C, L) f32 for the VPU path.
        w_il = jax.random.normal(ks[0], (num_channels, num_leds), jnp.float32)
        self.illum_w = jnp.abs(w_il) * (1.0 / np.sqrt(num_leds))
        self.illum_b = jnp.zeros((1, num_channels), jnp.float32)

        # Minimal 1-level UNet per head; per-head weights stacked on a head axis.
        self.p = {
            "e1a": _init_flat_conv(ks[1], 3, 3, num_channels, F, NH),
            "e1b": _init_flat_conv(ks[2], 3, 3, F, F, NH),
            "b1a": _init_flat_conv(ks[3], 3, 3, F, 2 * F, NH),
            "b1b": _init_flat_conv(ks[4], 3, 3, 2 * F, 2 * F, NH),
            "d1b": _init_flat_conv(ks[7], 3, 3, F, F, NH),
        }
        # Decoder conv over cat([up(b1), e1]) stored as the two weight halves.
        wu, _ = _init_flat_conv(ks[5], 3, 3, 2 * F, F, NH, fan_in=9 * 3 * F)
        we, bd = _init_flat_conv(ks[6], 3, 3, F, F, NH, fan_in=9 * 3 * F)
        self.p["d1a"] = (wu, we, bd)
        # Final 1x1 head conv kept in f32 (VPU weighted-sum path).
        w_out = jax.random.normal(ks[8], (NH, 1, F), jnp.float32) * (1.0 / np.sqrt(F))
        b_out = jnp.zeros((NH, 1, 1), jnp.float32)
        self.p["out"] = (w_out, b_out)

    def __call__(self, x_nchw):
        # NCHW (PyTorch convention) -> NHWC (channels on the 128-lane axis).
        x = jnp.transpose(x_nchw, (0, 2, 3, 1)).astype(jnp.float32)
        N = x.shape[0]
        p = self.p

        # Illumination + DetectorNoise(0.0) + Hardtanh + batch min/max, fused (f32).
        illum, bmin, bmax = illumination_pallas(x, self.illum_w, self.illum_b)
        self.batch_mins.append(bmin[0, 0])   # stays on device until inspected
        self.batch_maxs.append(bmax[0, 0])

        # Encoder (all heads share each pallas_call; head axis on the grid).
        e1 = conv2d_pallas(illum, *p["e1a"], batch=N, kh=3, kw=3, padding=1,
                           relu=True, shared_input=True)
        e1 = conv2d_pallas(e1, *p["e1b"], batch=N, kh=3, kw=3, padding=1, relu=True)
        d = maxpool2(e1)  # TODO(synk): fuse into e1b epilogue

        # Bottleneck
        b1 = conv2d_pallas(d, *p["b1a"], batch=N, kh=3, kw=3, padding=1, relu=True)
        b1 = conv2d_pallas(b1, *p["b1b"], batch=N, kh=3, kw=3, padding=1, relu=True)

        # Decoder: nearest 2x upsample (TODO: fold into d1a), skip concat folded
        # into a dual-input conv so the 3F-channel concat never hits HBM.
        u = upsample2(b1)
        wu, we, bd = p["d1a"]
        d1 = upconcat_conv_pallas(u, e1, wu, we, bd, batch=N, padding=1, relu=True)

        # d1b conv (+ReLU) and the final 1x1 head conv fused; lane-dense store.
        w_d1b, b_d1b = p["d1b"]
        w_out, b_out = p["out"]
        out = conv_out_pallas(d1, w_d1b, b_d1b, w_out, b_out, batch=N, padding=1)

        # (num_heads*N, H, W) head-major -> (num_heads, N, 1, H, W) like torch.stack.
        H, W = out.shape[-2], out.shape[-1]
        return out.reshape(self.num_heads, N, 1, H, W)


# ----------------------------------------------------------------------------
if __name__ == "__main__":
    num_heads, num_leds, num_channels, num_filters = 2, 4, 1, 8
    N, H, W = 2, 16, 16

    model = PallasModel(num_heads, num_leds, num_channels=num_channels,
                        num_filters=num_filters, noise=0.0, seed=0)

    x = jax.random.normal(jax.random.PRNGKey(0), (N, num_leds, H, W),
                          dtype=jnp.float32)

    out = jax.block_until_ready(model(x))
    assert out.shape == (num_heads, N, 1, H, W), out.shape
    assert bool(jnp.all(jnp.isfinite(out)))

    # f32 reference check for the (f32) illumination + hardtanh stage.
    x_nhwc = jnp.transpose(x, (0, 2, 3, 1))
    ref_illum = jnp.clip(
        jnp.einsum('nhwl,cl->nhwc', x_nhwc, model.illum_w) + model.illum_b,
        -1.0, 1.0)
    got_illum, _, _ = illumination_pallas(x_nhwc, model.illum_w, model.illum_b)
    assert bool(jnp.allclose(got_illum, ref_illum, atol=1e-4, rtol=1e-4))

    # bookkeeping stays on device until explicitly inspected
    _ = jax.block_until_ready((model.batch_mins[-1], model.batch_maxs[-1]))
    print("KERNEL_OK")
</pallas_src>

<mosaic_0001>
module attributes {stable_mosaic.version = 11 : i64} {
  func.func @_illum_kernel(%arg0: i32, %arg1: memref<1x16x16x4xf32, #tpu.memory_space<vmem>>, %arg2: memref<1x4xf32, #tpu.memory_space<vmem>>, %arg3: memref<1x1xf32, #tpu.memory_space<vmem>>, %arg4: memref<1x16x16x1xf32, #tpu.memory_space<vmem>>, %arg5: memref<1x1xf32, #tpu.memory_space<vmem>>, %arg6: memref<1x1xf32, #tpu.memory_space<vmem>>) attributes {dimension_semantics = [#tpu.dimension_semantics<arbitrary>], iteration_bounds = array<i64: 2>, scalar_prefetch = 0 : i64, scratch_operands = 0 : i64, tpu.core_type = #tpu.core_type<tc>, window_params = [{transform_indices = @transform_0, window_bounds = array<i64: 1, 16, 16, 4>}, {pipeline_mode = #tpu.pipeline_mode<synchronous>, transform_indices = @transform_1, window_bounds = array<i64: 1, 4>}, {pipeline_mode = #tpu.pipeline_mode<synchronous>, transform_indices = @transform_2, window_bounds = array<i64: 1, 1>}, {transform_indices = @transform_3, window_bounds = array<i64: 1, 16, 16, 1>}, {pipeline_mode = #tpu.pipeline_mode<synchronous>, transform_indices = @transform_4, window_bounds = array<i64: 1, 1>}, {pipeline_mode = #tpu.pipeline_mode<synchronous>, transform_indices = @transform_5, window_bounds = array<i64: 1, 1>}]} {
    %c0 = arith.constant 0 : index
    %c0_0 = arith.constant 0 : index
    %c0_1 = arith.constant 0 : index
    %c0_2 = arith.constant 0 : index
    %0 = vector.load %arg1[%c0, %c0_0, %c0_1, %c0_2] : memref<1x16x16x4xf32, #tpu.memory_space<vmem>>, vector<1x16x16x4xf32>
    %1 = vector.shape_cast %0 : vector<1x16x16x4xf32> to vector<16x16x4xf32>
    %2 = vector.shape_cast %1 : vector<16x16x4xf32> to vector<256x4xf32>
    %c0_3 = arith.constant 0 : index
    %c0_4 = arith.constant 0 : index
    %3 = vector.load %arg2[%c0_3, %c0_4] : memref<1x4xf32, #tpu.memory_space<vmem>>, vector<1x4xf32>
    %4 = vector.shape_cast %3 : vector<1x4xf32> to vector<4xf32>
    %5 = vector.shape_cast %4 : vector<4xf32> to vector<1x4xf32>
    %6 = vector.broadcast %5 : vector<1x4xf32> to vector<256x4xf32>
    %7 = arith.mulf %2, %6 : vector<256x4xf32>
    %cst = arith.constant dense<0.000000e+00> : vector<256xf32>
    %8 = vector.multi_reduction <add>, %7, %cst [1] : vector<256x4xf32> to vector<256xf32>
    %9 = vector.shape_cast %8 : vector<256xf32> to vector<256x1xf32>
    %c0_5 = arith.constant 0 : index
    %c0_6 = arith.constant 0 : index
    %10 = vector.load %arg3[%c0_5, %c0_6] : memref<1x1xf32, #tpu.memory_space<vmem>>, vector<1x1xf32>
    %11 = vector.broadcast %10 : vector<1x1xf32> to vector<256x1xf32>
    %12 = arith.addf %9, %11 : vector<256x1xf32>
    %cst_7 = arith.constant dense<0x7F800000> : vector<256xf32>
    %13 = vector.multi_reduction <minimumf>, %12, %cst_7 [1] : vector<256x1xf32> to vector<256xf32>
    %14 = vector.shape_cast %13 : vector<256xf32> to vector<256x1xf32>
    %cst_8 = arith.constant dense<0x7F800000> : vector<1xf32>
    %15 = vector.multi_reduction <minimumf>, %14, %cst_8 [0] : vector<256x1xf32> to vector<1xf32>
    %16 = vector.shape_cast %15 : vector<1xf32> to vector<1x1xf32>
    %cst_9 = arith.constant dense<0xFF800000> : vector<256xf32>
    %17 = vector.multi_reduction <maximumf>, %12, %cst_9 [1] : vector<256x1xf32> to vector<256xf32>
    %18 = vector.shape_cast %17 : vector<256xf32> to vector<256x1xf32>
    %cst_10 = arith.constant dense<0xFF800000> : vector<1xf32>
    %19 = vector.multi_reduction <maximumf>, %18, %cst_10 [0] : vector<256x1xf32> to vector<1xf32>
    %20 = vector.shape_cast %19 : vector<1xf32> to vector<1x1xf32>
    %c0_i32 = arith.constant 0 : i32
    %21 = arith.cmpi eq, %arg0, %c0_i32 : i32
    %22 = arith.extui %21 : i1 to i32
    %c0_i32_11 = arith.constant 0 : i32
    %23 = arith.cmpi ne, %22, %c0_i32_11 : i32
    scf.if %23 {
      %c0_20 = arith.constant 0 : index
      %c0_21 = arith.constant 0 : index
      %35 = vector.load %arg5[%c0_20, %c0_21] : memref<1x1xf32, #tpu.memory_space<vmem>>, vector<1x1xf32>
      tpu.vector_store %arg5[%c0_20, %c0_21], %16 {strides = array<i32>} : memref<1x1xf32, #tpu.memory_space<vmem>>, vector<1x1xf32>,
      %c0_22 = arith.constant 0 : index
      %c0_23 = arith.constant 0 : index
      %36 = vector.load %arg6[%c0_22, %c0_23] : memref<1x1xf32, #tpu.memory_space<vmem>>, vector<1x1xf32>
      tpu.vector_store %arg6[%c0_22, %c0_23], %20 {strides = array<i32>} : memref<1x1xf32, #tpu.memory_space<vmem>>, vector<1x1xf32>,
    } else {
    }
    %c0_i32_12 = arith.constant 0 : i32
    %24 = arith.cmpi sgt, %arg0, %c0_i32_12 : i32
    %25 = arith.extui %24 : i1 to i32
    %c0_i32_13 = arith.constant 0 : i32
    %26 = arith.cmpi ne, %25, %c0_i32_13 : i32
    scf.if %26 {
      %c0_20 = arith.constant 0 : index
      %c0_21 = arith.constant 0 : index
      %35 = vector.load %arg5[%c0_20, %c0_21] : memref<1x1xf32, #tpu.memory_space<vmem>>, vector<1x1xf32>
      %36 = arith.minimumf %35, %16 : vector<1x1xf32>
      %c0_22 = arith.constant 0 : index
      %c0_23 = arith.constant 0 : index
      %37 = vector.load %arg5[%c0_22, %c0_23] : memref<1x1xf32, #tpu.memory_space<vmem>>, vector<1x1xf32>
      tpu.vector_store %arg5[%c0_22, %c0_23], %36 {strides = array<i32>} : memref<1x1xf32, #tpu.memory_space<vmem>>, vector<1x1xf32>,
      %c0_24 = arith.constant 0 : index
      %c0_25 = arith.constant 0 : index
      %38 = vector.load %arg6[%c0_24, %c0_25] : memref<1x1xf32, #tpu.memory_space<vmem>>, vector<1x1xf32>
      %39 = arith.maximumf %38, %20 : vector<1x1xf32>
      %c0_26 = arith.constant 0 : index
      %c0_27 = arith.constant 0 : index
      %40 = vector.load %arg6[%c0_26, %c0_27] : memref<1x1xf32, #tpu.memory_space<vmem>>, vector<1x1xf32>
      tpu.vector_store %arg6[%c0_26, %c0_27], %39 {strides = array<i32>} : memref<1x1xf32, #tpu.memory_space<vmem>>, vector<1x1xf32>,
    } else {
    }
    %cst_14 = arith.constant -1.000000e+00 : f32
    %cst_15 = arith.constant 1.000000e+00 : f32
    %27 = vector.broadcast %cst_14 : f32 to vector<256x1xf32>
    %28 = arith.maximumf %27, %12 : vector<256x1xf32>
    %29 = vector.broadcast %cst_15 : f32 to vector<256x1xf32>
    %30 = arith.minimumf %29, %28 : vector<256x1xf32>
    %31 = vector.shape_cast %30 : vector<256x1xf32> to vector<16x16x1xf32>
    %c0_16 = arith.constant 0 : index
    %c0_17 = arith.constant 0 : index
    %c0_18 = arith.constant 0 : index
    %c0_19 = arith.constant 0 : index
    %32 = vector.load %arg4[%c0_16, %c0_17, %c0_18, %c0_19] : memref<1x16x16x1xf32, #tpu.memory_space<vmem>>, vector<1x16x16x1xf32>
    %33 = vector.shape_cast %32 : vector<1x16x16x1xf32> to vector<16x16x1xf32>
    %34 = vector.shape_cast %31 : vector<16x16x1xf32> to vector<1x16x16x1xf32>
    tpu.vector_store %arg4[%c0_16, %c0_17, %c0_18, %c0_19], %34 {strides = array<i32>} : memref<1x16x16x1xf32, #tpu.memory_space<vmem>>, vector<1x16x16x1xf32>,
    return
  }
  func.func @transform_0(%arg0: i32) -> (i32, i32, i32, i32) {
    %c0_i32 = arith.constant 0 : i32
    %c0_i32_0 = arith.constant 0 : i32
    %c0_i32_1 = arith.constant 0 : i32
    %c0_i32_2 = arith.constant 0 : i32
    return %arg0, %c0_i32, %c0_i32_0, %c0_i32_1 : i32, i32, i32, i32
  }
  func.func @transform_1(%arg0: i32) -> (i32, i32) {
    %c0_i32 = arith.constant 0 : i32
    %c0_i32_0 = arith.constant 0 : i32
    %c0_i32_1 = arith.constant 0 : i32
    return %c0_i32, %c0_i32_0 : i32, i32
  }
  func.func @transform_2(%arg0: i32) -> (i32, i32) {
    %c0_i32 = arith.constant 0 : i32
    %c0_i32_0 = arith.constant 0 : i32
    %c0_i32_1 = arith.constant 0 : i32
    return %c0_i32, %c0_i32_0 : i32, i32
  }
  func.func @transform_3(%arg0: i32) -> (i32, i32, i32, i32) {
    %c0_i32 = arith.constant 0 : i32
    %c0_i32_0 = arith.constant 0 : i32
    %c0_i32_1 = arith.constant 0 : i32
    %c0_i32_2 = arith.constant 0 : i32
    return %arg0, %c0_i32, %c0_i32_0, %c0_i32_1 : i32, i32, i32, i32
  }
  func.func @transform_4(%arg0: i32) -> (i32, i32) {
    %c0_i32 = arith.constant 0 : i32
    %c0_i32_0 = arith.constant 0 : i32
    %c0_i32_1 = arith.constant 0 : i32
    return %c0_i32, %c0_i32_0 : i32, i32
  }
  func.func @transform_5(%arg0: i32) -> (i32, i32) {
    %c0_i32 = arith.constant 0 : i32
    %c0_i32_0 = arith.constant 0 : i32
    %c0_i32_1 = arith.constant 0 : i32
    return %c0_i32, %c0_i32_0 : i32, i32
  }
}

</mosaic_0001>

<bundles_post_ra>
// kernel: tpu_custom_call.1
= control target key start
LH: loop header
LB: loop body
LE: loop exit
PB: predicated region body
PF: predicated region fallthrough
CT: control target
= control target key end

     0   :  { %s1440_s0 = inlined_call_operand.vmem [shape: f32[2,16,16,4], index: 0, kind: input, shape index: {}]   ;;  %s1441_s1 = inlined_call_operand.vmem [shape: f32[1,4], index: 1, kind: input, shape index: {}]   ;;  %s1442_s2 = inlined_call_operand.<no memory space> [shape: f32[1,1], index: 2, kind: input, shape index: {}]   ;;  %s1443_s3 = inlined_call_operand.vmem [shape: f32[2,16,16,1], index: 3, kind: output, shape index: {0}]   ;;  %s1444_s4 = inlined_call_operand.hbm [shape: f32[1,1], index: 4, kind: output, shape index: {1}]   ;;  %s1445_s5 = inlined_call_operand.hbm [shape: f32[1,1], index: 5, kind: output, shape index: {2}]  }
   0x1   :  { %v11_v0 = vstv %s1442_s2 }
   0x2   :  { %12 = vst [vmem:[#allocation2] sm:$0x1] %v11_v0 }
   0x3   :  { %13 = vsyncpa [#allocation4], 0 }
   0x4   :  { %14 = vsyncpa [#allocation6], 0  ;;  %s959_s20 = smov 0  }
   0x5 LB: > { %s965_s21 = sadd.s32 4294967295, %s922_s20   ;;  %p789_p0 = scmp.ge.s32.totalorder %s922_s20, 1  ;;  %s922_s20 = sphi %s959_s20, %s20_s20  }
   0x6   : > { %p186_p1 = scmp.lt.s32.totalorder %s922_s20, 3 }
   0x8   : > { %p187_p2 = pnand %p789_p0, %p186_p1 }
   0x9   : > { %p214_p3 = scmp.lt.s32.totalorder (!%p187_p2), %s965_s21, 1  ;;  %p796_p4 = scmp.ne.s32.totalorder (!%p187_p2), %s965_s21, 0 }
   0xa   : > { %190 = sbr.rel (%p187_p2) target bundleno = 292 (0x124), region = 32 }
   0xf   : > { %s215_s2 = scalar_select %p214_p3, %s965_s21, 1  ;;  %v974_v1 = vld [vmem:[%s1441_s1] ss:$0 sm:$0xff]  ;;  %vm295_vm0 = vcmask 31744   ;;  %vm431_vm1 = vcmask 7168  }
  0x11   : > { %s836_s22 = sshll.u32 %s215_s2, 8 }
  0x12   : > { %s979_s27 = scalar_lea.vmem %s1440_s0, %s836_s22  ;;  %s984_s30 = scalar_lea.vmem %s1443_s3, %s836_s22 }
  0x13   : > { %v226_v2 = vld [vmem:[%s979_s27 + $0x10] sm:$0xff]  ;;  %v224_v3 = vld [vmem:[%s979_s27] sm:$0xff]  ;;  %v227_v4 = vld [vmem:[%s979_s27 + $0x18] sm:$0xff] }
  0x14   : > { %v265_v5 = vmul.f32 %v974_v1, %v226_v2  ;;  %v263_v6 = vmul.f32 %v974_v1, %v224_v3  ;;  %v266_v7 = vmul.f32 %v974_v1, %v227_v4  ;;  %v225_v8 = vld [vmem:[%s979_s27 + $0x8] sm:$0xff]  ;;  %v228_v11 = vld [vmem:[%s979_s27 + $0x20] sm:$0xff]  ;;  %v231_v18 = vld [vmem:[%s979_s27 + $0x38] sm:$0xff] }
  0x15   : > { %v264_v9 = vmul.f32 %v974_v1, %v225_v8  ;;  %v229_v10 = vld [vmem:[%s979_s27 + $0x28] sm:$0xff]  ;;  %v267_v17 = vmul.f32 %v974_v1, %v228_v11  ;;  %v230_v19 = vld [vmem:[%s979_s27 + $0x30] sm:$0xff]  ;;  %v270_v22 = vmul.f32 %v974_v1, %v231_v18  ;;  %v232_v25 = vld [vmem:[%s979_s27 + $0x40] sm:$0xff] }
  0x16   : > { %v302_v12 = vsel %vm295_vm0, %v265_v5, 0.0  ;;  %v296_v13 = vsel %vm295_vm0, %v263_v6, 0.0  ;;  %v305_v14 = vsel %vm295_vm0, %v266_v7, 0.0  ;;  %v268_v16 = vmul.f32 %v974_v1, %v229_v10  ;;  %v233_v24 = vld [vmem:[%s979_s27 + $0x48] sm:$0xff]  ;;  %v235_v30 = vld [vmem:[%s979_s27 + $0x58] sm:$0xff]  ;;  %v234_v31 = vld [vmem:[%s979_s27 + $0x50] sm:$0xff] }
  0x17   : > { %303 = vadd.xlane.f32.xlu1 %v302_v12  ;;  %297 = vadd.xlane.f32.xlu0 %v296_v13  ;;  %v299_v15 = vsel %vm295_vm0, %v264_v9, 0.0  ;;  %v308_v21 = vsel %vm295_vm0, %v267_v17, 0.0  ;;  %v269_v23 = vmul.f32 %v974_v1, %v230_v19  ;;  %v317_v26 = vsel %vm295_vm0, %v270_v22, 0.0  ;;  %v237_v36 = vld [vmem:[%s979_s27 + $0x68] sm:$0xff]  ;;  %v236_v37 = vld [vmem:[%s979_s27 + $0x60] sm:$0xff]  ;;  %v239_v42 = vld [vmem:[%s979_s27 + $0x78] sm:$0xff] }
  0x18   : > { %v311_v20 = vsel %vm295_vm0, %v268_v16, 0.0  ;;  %v272_v28 = vmul.f32 %v974_v1, %v233_v24  ;;  %v271_v29 = vmul.f32 %v974_v1, %v232_v25  ;;  %v274_v34 = vmul.f32 %v974_v1, %v235_v30  ;;  %v238_v43 = vld [vmem:[%s979_s27 + $0x70] sm:$0xff]  ;;  %v241_v48 = vld [vmem:[%s979_s27 + $0x88] sm:$0xff]  ;;  %v240_v49 = vld [vmem:[%s979_s27 + $0x80] sm:$0xff] }
  0x19   : > { %v314_v27 = vsel %vm295_vm0, %v269_v23, 0.0  ;;  %v273_v35 = vmul.f32 %v974_v1, %v234_v31  ;;  %v276_v40 = vmul.f32 %v974_v1, %v237_v36  ;;  %v275_v41 = vmul.f32 %v974_v1, %v236_v37  ;;  %v243_v54 = vld [vmem:[%s979_s27 + $0x98] sm:$0xff]  ;;  %v242_v55 = vld [vmem:[%s979_s27 + $0x90] sm:$0xff]  ;;  %v245_v60 = vld [vmem:[%s979_s27 + $0xa8] sm:$0xff] }
  0x1a   : > { %v323_v32 = vsel %vm295_vm0, %v272_v28, 0.0  ;;  %v320_v33 = vsel %vm295_vm0, %v271_v29, 0.0  ;;  %v329_v38 = vsel %vm295_vm0, %v274_v34, 0.0  ;;  %v278_v46 = vmul.f32 %v974_v1, %v239_v42  ;;  %v244_v61 = vld [vmem:[%s979_s27 + $0xa0] sm:$0xff]  ;;  %v247_v3 = vld [vmem:[%s979_s27 + $0xb8] sm:$0xff]  ;;  %v246_v4 = vld [vmem:[%s979_s27 + $0xb0] sm:$0xff] }
  0x1b   : > { %306 = vadd.xlane.f32.xlu1 %v305_v14  ;;  %300 = vadd.xlane.f32.xlu0 %v299_v15  ;;  %v326_v39 = vsel %vm295_vm0, %v273_v35, 0.0  ;;  %v335_v44 = vsel %vm295_vm0, %v276_v40, 0.0  ;;  %v332_v45 = vsel %vm295_vm0, %v275_v41, 0.0  ;;  %v277_v47 = vmul.f32 %v974_v1, %v238_v43  ;;  %v249_v9 = vld [vmem:[%s979_s27 + $0xc8] sm:$0xff]  ;;  %v248_v10 = vld [vmem:[%s979_s27 + $0xc0] sm:$0xff]  ;;  %v251_v15 = vld [vmem:[%s979_s27 + $0xd8] sm:$0xff] }
  0x1c   : > { %v341_v50 = vsel %vm295_vm0, %v278_v46, 0.0  ;;  %v280_v52 = vmul.f32 %v974_v1, %v241_v48  ;;  %v279_v53 = vmul.f32 %v974_v1, %v240_v49  ;;  %v282_v58 = vmul.f32 %v974_v1, %v243_v54  ;;  %v250_v16 = vld [vmem:[%s979_s27 + $0xd0] sm:$0xff]  ;;  %v252_v22 = vld [vmem:[%s979_s27 + $0xe0] sm:$0xff] }
  0x1d   : > { %v338_v51 = vsel %vm295_vm0, %v277_v47, 0.0  ;;  %v281_v59 = vmul.f32 %v974_v1, %v242_v55  ;;  %v284_v0 = vmul.f32 %v974_v1, %v245_v60  ;;  %v283_v2 = vmul.f32 %v974_v1, %v244_v61  ;;  %v254_v28 = vld [vmem:[%s979_s27 + $0xf0] sm:$0xff]  ;;  %v1082_v46 = vld [vmem:[#allocation2] ss:$0 sm:$0xff] }
  0x1e   : > { %v347_v56 = vsel %vm295_vm0, %v280_v52, 0.0  ;;  %v344_v57 = vsel %vm295_vm0, %v279_v53, 0.0  ;;  %v353_v62 = vsel %vm295_vm0, %v282_v58, 0.0  ;;  %v286_v7 = vmul.f32 %v974_v1, %v247_v3 }
  0x1f   : > { %312 = vadd.xlane.f32.xlu1 %v311_v20  ;;  %309 = vadd.xlane.f32.xlu0 %v308_v21  ;;  %v350_v63 = vsel %vm295_vm0, %v281_v59, 0.0  ;;  %v359_v5 = vsel %vm295_vm0, %v284_v0, 0.0  ;;  %v356_v6 = vsel %vm295_vm0, %v283_v2, 0.0  ;;  %v285_v8 = vmul.f32 %v974_v1, %v246_v4  ;;  %v253_v21 = vld [vmem:[%s979_s27 + $0xe8] sm:$0xff] }
  0x20   : > { %v365_v11 = vsel %vm295_vm0, %v286_v7, 0.0  ;;  %v288_v13 = vmul.f32 %v974_v1, %v249_v9  ;;  %v287_v14 = vmul.f32 %v974_v1, %v248_v10  ;;  %v290_v19 = vmul.f32 %v974_v1, %v251_v15 }
  0x21   : > { %v362_v12 = vsel %vm295_vm0, %v285_v8, 0.0  ;;  %v289_v20 = vmul.f32 %v974_v1, %v250_v16  ;;  %v292_v25 = vmul.f32 %v974_v1, %v253_v21 }
  0x22   : > { %v371_v17 = vsel %vm295_vm0, %v288_v13, 0.0  ;;  %v368_v18 = vsel %vm295_vm0, %v287_v14, 0.0  ;;  %v377_v23 = vsel %vm295_vm0, %v290_v19, 0.0 }
  0x23   : > { %318 = vadd.xlane.f32.xlu1 %v317_v26  ;;  %315 = vadd.xlane.f32.xlu0 %v314_v27  ;;  %v374_v24 = vsel %vm295_vm0, %v289_v20, 0.0  ;;  %v291_v26 = vmul.f32 %v974_v1, %v252_v22  ;;  %v255_v27 = vld [vmem:[%s979_s27 + $0xf8] sm:$0xff]  ;;  %v383_v29 = vsel %vm295_vm0, %v292_v25, 0.0 }
  0x24   : > { %v294_v31 = vmul.f32 %v974_v1, %v255_v27 }
  0x25   : > { %v380_v30 = vsel %vm295_vm0, %v291_v26, 0.0 }
  0x27   : > { %324 = vadd.xlane.f32.xlu1 %v323_v32  ;;  %321 = vadd.xlane.f32.xlu0 %v320_v33  ;;  %v293_v32 = vmul.f32 %v974_v1, %v254_v28  ;;  %v389_v33 = vsel %vm295_vm0, %v294_v31, 0.0 }
  0x29   : > { %v386_v34 = vsel %vm295_vm0, %v293_v32, 0.0 }
  0x2b   : > { %330 = vadd.xlane.f32.xlu1 %v329_v38  ;;  %327 = vadd.xlane.f32.xlu0 %v326_v39 }
  0x2f   : > { %336 = vadd.xlane.f32.xlu1 %v335_v44  ;;  %333 = vadd.xlane.f32.xlu0 %v332_v45 }
  0x33   : > { %342 = vadd.xlane.f32.xlu1 %v341_v50  ;;  %339 = vadd.xlane.f32.xlu0 %v338_v51 }
  0x37   : > { %348 = vadd.xlane.f32.xlu1 %v347_v56  ;;  %345 = vadd.xlane.f32.xlu0 %v344_v57 }
  0x3b   : > { %354 = vadd.xlane.f32.xlu1 %v353_v62  ;;  %351 = vadd.xlane.f32.xlu0 %v350_v63 }
  0x3f   : > { %360 = vadd.xlane.f32.xlu1 %v359_v5  ;;  %357 = vadd.xlane.f32.xlu0 %v356_v6 }
  0x43   : > { %366 = vadd.xlane.f32.xlu1 %v365_v11  ;;  %363 = vadd.xlane.f32.xlu0 %v362_v12 }
  0x47   : > { %372 = vadd.xlane.f32.xlu1 %v371_v17  ;;  %369 = vadd.xlane.f32.xlu0 %v368_v18 }
  0x4b   : > { %378 = vadd.xlane.f32.xlu1 %v377_v23  ;;  %375 = vadd.xlane.f32.xlu0 %v374_v24 }
  0x4f   : > { %384 = vadd.xlane.f32.xlu1 %v383_v29  ;;  %381 = vadd.xlane.f32.xlu0 %v380_v30 }
  0x53   : > { %390 = vadd.xlane.f32.xlu1 %v389_v33  ;;  %387 = vadd.xlane.f32.xlu0 %v386_v34 }
  0xa0   : > { %v304_v35 = vpop.xlane.xlu1 %303  ;;  %v298_v36 = vpop.xlane.xlu0 %297 }
  0xa1   : > { %v1085_v47 = vadd.f32 %v1082_v46, %v304_v35  ;;  %v1088_v50 = vadd.f32 %v1082_v46, %v298_v36 }
  0xa3   : > { %v434_v55 = vsel %vm431_vm1, %v1085_v47, inf  ;;  %v503_v59 = vsel %vm431_vm1, %v1085_v47, -inf  ;;  %v432_v60 = vsel %vm431_vm1, %v1088_v50, inf  ;;  %v501_v61 = vsel %vm431_vm1, %v1088_v50, -inf }
  0xa4   : > { %v307_v37 = vpop.xlane.xlu1 %306  ;;  %v301_v38 = vpop.xlane.xlu0 %300 }
  0xa5   : > { %v1091_v51 = vadd.f32 %v1082_v46, %v307_v37  ;;  %v1094_v52 = vadd.f32 %v1082_v46, %v301_v38 }
  0xa7   : > { %v435_v63 = vsel %vm431_vm1, %v1091_v51, inf  ;;  %v504_v0 = vsel %vm431_vm1, %v1091_v51, -inf  ;;  %v433_v2 = vsel %vm431_vm1, %v1094_v52, inf  ;;  %v502_v8 = vsel %vm431_vm1, %v1094_v52, -inf }
  0xa8   : > { %v313_v39 = vpop.xlane.xlu1 %312  ;;  %v310_v40 = vpop.xlane.xlu0 %309 }
  0xa9   : > { %v1097_v53 = vadd.f32 %v1082_v46, %v313_v39  ;;  %v1100_v54 = vadd.f32 %v1082_v46, %v310_v40 }
  0xab   : > { %v438_v3 = vsel %vm431_vm1, %v1097_v53, inf  ;;  %v507_v4 = vsel %vm431_vm1, %v1097_v53, -inf  ;;  %v436_v5 = vsel %vm431_vm1, %v1100_v54, inf  ;;  %v505_v6 = vsel %vm431_vm1, %v1100_v54, -inf }
  0xac   : > { %v319_v41 = vpop.xlane.xlu1 %318  ;;  %v316_v42 = vpop.xlane.xlu0 %315  ;;  %v439_v14 = vmin.f32 %v433_v2, %v438_v3  ;;  %v508_v18 = vmax.f32 %v502_v8, %v507_v4  ;;  %v437_v19 = vmin.f32 %v432_v60, %v436_v5  ;;  %v506_v20 = vmax.f32 %v501_v61, %v505_v6 }
  0xad   : > { %v1105_v56 = vadd.f32 %v1082_v46, %v319_v41  ;;  %v1114_v62 = vadd.f32 %v1082_v46, %v316_v42 }
  0xaf   : > { %v442_v9 = vsel %vm431_vm1, %v1105_v56, inf  ;;  %v511_v10 = vsel %vm431_vm1, %v1105_v56, -inf  ;;  %v440_v15 = vsel %vm431_vm1, %v1114_v62, inf  ;;  %v509_v21 = vsel %vm431_vm1, %v1114_v62, -inf }
  0xb0   : > { %v325_v43 = vpop.xlane.xlu1 %324  ;;  %v322_v44 = vpop.xlane.xlu0 %321  ;;  %v443_v22 = vmin.f32 %v435_v63, %v442_v9  ;;  %v512_v23 = vmax.f32 %v504_v0, %v511_v10  ;;  %v441_v26 = vmin.f32 %v434_v55, %v440_v15  ;;  %v510_v36 = vmax.f32 %v503_v59, %v509_v21 }
  0xb1   : > { %v1131_v7 = vadd.f32 %v1082_v46, %v325_v43  ;;  %v1140_v11 = vadd.f32 %v1082_v46, %v322_v44 }
  0xb3   : > { %v446_v24 = vsel %vm431_vm1, %v1131_v7, inf  ;;  %v515_v25 = vsel %vm431_vm1, %v1131_v7, -inf  ;;  %v444_v27 = vsel %vm431_vm1, %v1140_v11, inf  ;;  %v513_v28 = vsel %vm431_vm1, %v1140_v11, -inf }
  0xb4   : > { %v331_v45 = vpop.xlane.xlu1 %330  ;;  %v328_v1 = vpop.xlane.xlu0 %327  ;;  %v447_v37 = vmin.f32 %v439_v14, %v446_v24  ;;  %v516_v38 = vmax.f32 %v508_v18, %v515_v25  ;;  %v445_v40 = vmin.f32 %v437_v19, %v444_v27  ;;  %v514_v41 = vmax.f32 %v506_v20, %v513_v28 }
  0xb5   : > { %v1145_v16 = vadd.f32 %v1082_v46, %v331_v45  ;;  %v1148_v17 = vadd.f32 %v1082_v46, %v328_v1 }
  0xb7   : > { %v450_v32 = vsel %vm431_vm1, %v1145_v16, inf  ;;  %v519_v33 = vsel %vm431_vm1, %v1145_v16, -inf  ;;  %v448_v34 = vsel %vm431_vm1, %v1148_v17, inf  ;;  %v517_v42 = vsel %vm431_vm1, %v1148_v17, -inf }
  0xb8   : > { %v337_v48 = vpop.xlane.xlu1 %336  ;;  %v334_v49 = vpop.xlane.xlu0 %333  ;;  %v451_v44 = vmin.f32 %v443_v22, %v450_v32  ;;  %v520_v45 = vmax.f32 %v512_v23, %v519_v33  ;;  %v449_v1 = vmin.f32 %v441_v26, %v448_v34  ;;  %v518_v61 = vmax.f32 %v510_v36, %v517_v42 }
  0xb9   : > { %v1161_v29 = vadd.f32 %v1082_v46, %v337_v48  ;;  %v1170_v35 = vadd.f32 %v1082_v46, %v334_v49 }
  0xbb   : > { %v454_v48 = vsel %vm431_vm1, %v1161_v29, inf  ;;  %v452_v59 = vsel %vm431_vm1, %v1170_v35, inf  ;;  %v521_v60 = vsel %vm431_vm1, %v1170_v35, -inf }
  0xbc   : > { %v343_v57 = vpop.xlane.xlu1 %342  ;;  %v340_v58 = vpop.xlane.xlu0 %339  ;;  %v455_v3 = vmin.f32 %v447_v37, %v454_v48  ;;  %v453_v9 = vmin.f32 %v445_v40, %v452_v59  ;;  %v522_v10 = vmax.f32 %v514_v41, %v521_v60 }
  0xbd   : > { %v1173_v39 = vadd.f32 %v1082_v46, %v343_v57  ;;  %v1178_v43 = vadd.f32 %v1082_v46, %v340_v58  ;;  %v523_v57 = vsel %vm431_vm1, %v1161_v29, -inf }
  0xbe   : > { %v524_v8 = vmax.f32 %v516_v38, %v523_v57 }
  0xbf   : > { %v458_v63 = vsel %vm431_vm1, %v1173_v39, inf  ;;  %v527_v0 = vsel %vm431_vm1, %v1173_v39, -inf  ;;  %v456_v4 = vsel %vm431_vm1, %v1178_v43, inf }
  0xc0   : > { %v349_v12 = vpop.xlane.xlu1 %348  ;;  %v346_v13 = vpop.xlane.xlu0 %345  ;;  %v528_v18 = vmax.f32 %v520_v45, %v527_v0  ;;  %v457_v21 = vmin.f32 %v449_v1, %v456_v4 }
  0xc1   : > { %v1189_v58 = vadd.f32 %v1082_v46, %v349_v12  ;;  %v1196_v2 = vadd.f32 %v1082_v46, %v346_v13  ;;  %v525_v12 = vsel %vm431_vm1, %v1178_v43, -inf  ;;  %v459_v13 = vmin.f32 %v451_v44, %v458_v63 }
  0xc3   : > { %v462_v19 = vsel %vm431_vm1, %v1189_v58, inf  ;;  %v531_v20 = vsel %vm431_vm1, %v1189_v58, -inf  ;;  %v460_v22 = vsel %vm431_vm1, %v1196_v2, inf  ;;  %v529_v23 = vsel %vm431_vm1, %v1196_v2, -inf }
  0xc4   : > { %v355_v30 = vpop.xlane.xlu1 %354  ;;  %v352_v31 = vpop.xlane.xlu0 %351  ;;  %v532_v32 = vmax.f32 %v524_v8, %v531_v20  ;;  %v461_v37 = vmin.f32 %v453_v9, %v460_v22  ;;  %v530_v38 = vmax.f32 %v522_v10, %v529_v23 }
  0xc5   : > { %v1201_v5 = vadd.f32 %v1082_v46, %v355_v30  ;;  %v1204_v6 = vadd.f32 %v1082_v46, %v352_v31  ;;  %v526_v30 = vmax.f32 %v518_v61, %v525_v12  ;;  %v463_v31 = vmin.f32 %v455_v3, %v462_v19 }
  0xc7   : > { %v466_v25 = vsel %vm431_vm1, %v1201_v5, inf  ;;  %v535_v26 = vsel %vm431_vm1, %v1201_v5, -inf  ;;  %v464_v27 = vsel %vm431_vm1, %v1204_v6, inf  ;;  %v533_v40 = vsel %vm431_vm1, %v1204_v6, -inf }
  0xc8   : > { %v361_v49 = vpop.xlane.xlu1 %360  ;;  %v358_v55 = vpop.xlane.xlu0 %357  ;;  %v467_v42 = vmin.f32 %v459_v13, %v466_v25  ;;  %v536_v44 = vmax.f32 %v528_v18, %v535_v26  ;;  %v465_v45 = vmin.f32 %v457_v21, %v464_v27  ;;  %v534_v59 = vmax.f32 %v526_v30, %v533_v40 }
  0xc9   : > { %v1217_v24 = vadd.f32 %v1082_v46, %v361_v49  ;;  %v1226_v28 = vadd.f32 %v1082_v46, %v358_v55 }
  0xcb   : > { %v470_v1 = vsel %vm431_vm1, %v1217_v24, inf  ;;  %v539_v48 = vsel %vm431_vm1, %v1217_v24, -inf  ;;  %v468_v49 = vsel %vm431_vm1, %v1226_v28, inf  ;;  %v537_v55 = vsel %vm431_vm1, %v1226_v28, -inf }
  0xcc   : > { %v367_v14 = vpop.xlane.xlu1 %366  ;;  %v364_v15 = vpop.xlane.xlu0 %363  ;;  %v471_v4 = vmin.f32 %v463_v31, %v470_v1  ;;  %v540_v12 = vmax.f32 %v532_v32, %v539_v48 }
  0xcd   : > { %v1229_v33 = vadd.f32 %v1082_v46, %v367_v14  ;;  %v1234_v41 = vadd.f32 %v1082_v46, %v364_v15  ;;  %v469_v14 = vmin.f32 %v461_v37, %v468_v49  ;;  %v538_v15 = vmax.f32 %v530_v38, %v537_v55 }
  0xcf   : > { %v474_v60 = vsel %vm431_vm1, %v1229_v33, inf  ;;  %v543_v61 = vsel %vm431_vm1, %v1229_v33, -inf  ;;  %v472_v8 = vsel %vm431_vm1, %v1234_v41, inf  ;;  %v541_v9 = vsel %vm431_vm1, %v1234_v41, -inf }
  0xd0   : > { %v373_v34 = vpop.xlane.xlu1 %372  ;;  %v370_v36 = vpop.xlane.xlu0 %369  ;;  %v475_v18 = vmin.f32 %v467_v42, %v474_v60  ;;  %v544_v19 = vmax.f32 %v536_v44, %v543_v61  ;;  %v473_v22 = vmin.f32 %v465_v45, %v472_v8  ;;  %v542_v23 = vmax.f32 %v534_v59, %v541_v9 }
  0xd1   : > { %v1245_v57 = vadd.f32 %v1082_v46, %v373_v34  ;;  %v1252_v63 = vadd.f32 %v1082_v46, %v370_v36 }
  0xd3   : > { %v478_v20 = vsel %vm431_vm1, %v1245_v57, inf  ;;  %v547_v21 = vsel %vm431_vm1, %v1245_v57, -inf  ;;  %v476_v25 = vsel %vm431_vm1, %v1252_v63, inf  ;;  %v545_v26 = vsel %vm431_vm1, %v1252_v63, -inf }
  0xd4   : > { %v379_v0 = vpop.xlane.xlu1 %378  ;;  %v376_v3 = vpop.xlane.xlu0 %375  ;;  %v479_v37 = vmin.f32 %v471_v4, %v478_v20  ;;  %v548_v38 = vmax.f32 %v540_v12, %v547_v21  ;;  %v477_v49 = vmin.f32 %v469_v14, %v476_v25  ;;  %v546_v55 = vmax.f32 %v538_v15, %v545_v26 }
  0xd5   : > { %v1259_v10 = vadd.f32 %v1082_v46, %v379_v0  ;;  %v1262_v13 = vadd.f32 %v1082_v46, %v376_v3 }
  0xd7   : > { %v482_v31 = vsel %vm431_vm1, %v1259_v10, inf  ;;  %v551_v32 = vsel %vm431_vm1, %v1259_v10, -inf  ;;  %v480_v40 = vsel %vm431_vm1, %v1262_v13, inf  ;;  %v549_v42 = vsel %vm431_vm1, %v1262_v13, -inf }
  0xd8   : > { %v385_v27 = vpop.xlane.xlu1 %384  ;;  %v382_v30 = vpop.xlane.xlu0 %381  ;;  %v483_v59 = vmin.f32 %v475_v18, %v482_v31  ;;  %v552_v60 = vmax.f32 %v544_v19, %v551_v32  ;;  %v481_v3 = vmin.f32 %v473_v22, %v480_v40  ;;  %v550_v4 = vmax.f32 %v542_v23, %v549_v42 }
  0xd9   : > { %v1277_v34 = vadd.f32 %v1082_v46, %v385_v27  ;;  %v1280_v36 = vadd.f32 %v1082_v46, %v382_v30 }
  0xdb   : > { %v486_v44 = vsel %vm431_vm1, %v1277_v34, inf  ;;  %v555_v45 = vsel %vm431_vm1, %v1277_v34, -inf  ;;  %v484_v1 = vsel %vm431_vm1, %v1280_v36, inf  ;;  %v553_v48 = vsel %vm431_vm1, %v1280_v36, -inf }
  0xdc   : > { %v391_v61 = vpop.xlane.xlu1 %390  ;;  %v388_v0 = vpop.xlane.xlu0 %387  ;;  %v487_v12 = vmin.f32 %v479_v37, %v486_v44  ;;  %v556_v20 = vmax.f32 %v548_v38, %v555_v45  ;;  %v485_v21 = vmin.f32 %v477_v49, %v484_v1  ;;  %v554_v27 = vmax.f32 %v546_v55, %v553_v48 }
  0xdd   : > { %v1295_v8 = vadd.f32 %v1082_v46, %v391_v61  ;;  %v1298_v9 = vadd.f32 %v1082_v46, %v388_v0 }
  0xde   : > { %v492_v26 = vmin.f32 %v485_v21, %v487_v12  ;;  %v561_v30 = vmax.f32 %v554_v27, %v556_v20 }
  0xdf   : > { %v490_v14 = vsel %vm431_vm1, %v1295_v8, inf  ;;  %v559_v15 = vsel %vm431_vm1, %v1295_v8, -inf  ;;  %v488_v18 = vsel %vm431_vm1, %v1298_v9, inf  ;;  %v557_v19 = vsel %vm431_vm1, %v1298_v9, -inf }
  0xe0   : > { %v491_v22 = vmin.f32 %v483_v59, %v490_v14  ;;  %v560_v23 = vmax.f32 %v552_v60, %v559_v15  ;;  %v489_v46 = vmin.f32 %v481_v3, %v488_v18  ;;  %v558_v25 = vmax.f32 %v550_v4, %v557_v19 }
  0xe2   : > { %v493_v31 = vmin.f32 %v489_v46, %v491_v22  ;;  %v562_v32 = vmax.f32 %v558_v25, %v560_v23 }
  0xe4   : > { %v494_v37 = vmin.f32 %v492_v26, %v493_v31  ;;  %v563_v38 = vmax.f32 %v561_v30, %v562_v32 }
  0xe6   : > { %v495_v40 = vrot.slane %v494_v37, 4  ;;  %v564_v42 = vrot.slane %v563_v38, 4 }
  0xe8   : > { %v496_v44 = vmin.f32 %v494_v37, %v495_v40  ;;  %v565_v45 = vmax.f32 %v563_v38, %v564_v42 }
  0xea   : > { %v497_v1 = vrot.slane %v496_v44, 2  ;;  %v566_v48 = vrot.slane %v565_v45, 2 }
  0xec   : > { %v498_v49 = vmin.f32 %v496_v44, %v497_v1  ;;  %v567_v55 = vmax.f32 %v565_v45, %v566_v48  ;;  %573 = sbr.rel (%p796_p4) target bundleno = 243 (0xf3), region = 36 }
  0xee   : > { %v499_v61 = vrot.slane %v498_v49, 1  ;;  %v568_v0 = vrot.slane %v567_v55, 1 }
  0xf0   : > { %v500_v59 = vmin.f32 %v498_v49, %v499_v61  ;;  %v569_v60 = vmax.f32 %v567_v55, %v568_v0 }
  0xf1   : > { %vm574_vm2 = vcmask 0  }
  0xf2   : > { %575 = vst.msk [vmem:[#allocation3] sm:$0x1] %vm574_vm2, %v500_v59  ;;  %576 = vst.msk [vmem:[#allocation5] sm:$0x1] %vm574_vm2, %v569_v60 }
  0xf3 PF: > { %p797_p5 = scmp.le.s32.totalorder %s965_s21, 0 }
  0xf5   : > { %580 = sbr.rel (%p797_p5) target bundleno = 254 (0xfe), region = 40 }
  0xfa   : > { %v581_v3 = vld [vmem:[#allocation3] sm:$0x1]  ;;  %vm583_vm3 = vcmask 0   ;;  %v585_v4 = vld [vmem:[#allocation5] sm:$0x1] }
  0xfb   : > { %v582_v12 = vmin.f32 %v581_v3, %v500_v59  ;;  %v586_v20 = vmax.f32 %v585_v4, %v569_v60 }
  0xfd   : > { %584 = vst.msk [vmem:[#allocation3] sm:$0x1] %vm583_vm3, %v582_v12  ;;  %587 = vst.msk [vmem:[#allocation5] sm:$0x1] %vm583_vm3, %v586_v20 }
  0xfe PF: > { %v798_v21 = vclamps-f32 %v1088_v50, 1.0  ;;  %v799_v27 = vclamps-f32 %v1094_v52, 1.0  ;;  %v800_v14 = vclamps-f32 %v1085_v47, 1.0  ;;  %v801_v15 = vclamps-f32 %v1091_v51, 1.0  ;;  %p846_p6 = scmp.eq.s32.totalorder %s965_s21, 1  ;;  %s924_s6 = smov [#allocation3]  }
  0xff   : > { %v802_v18 = vclamps-f32 %v1100_v54, 1.0  ;;  %v803_v19 = vclamps-f32 %v1097_v53, 1.0  ;;  %v804_v22 = vclamps-f32 %v1114_v62, 1.0  ;;  %v805_v23 = vclamps-f32 %v1105_v56, 1.0  ;;  %s699_s7 = sshll.u32 %s924_s6, 4  ;;  %s925_s8 = smov [#allocation5]   ;;  %s700_s7 = int_to_ptr.vmem [resolvable:$true] %s699_s7 }
 0x100   : > { %652 = vst.msk [vmem:[%s984_s30] sm:$0xff] %vm431_vm1, %v798_v21  ;;  %653 = vst.msk [vmem:[%s984_s30 + $0x8] sm:$0xff] %vm431_vm1, %v799_v27  ;;  %v806_v47 = vclamps-f32 %v1140_v11, 1.0  ;;  %v807_v50 = vclamps-f32 %v1131_v7, 1.0  ;;  %v808_v51 = vclamps-f32 %v1148_v17, 1.0  ;;  %v809_v52 = vclamps-f32 %v1145_v16, 1.0  ;;  %p867_p10 = scmp.lt.s32.totalorder %s700_s7, %s700_s7 }
 0x101   : > { %654 = vst.msk [vmem:[%s984_s30 + $0x10] sm:$0xff] %vm431_vm1, %v800_v14  ;;  %655 = vst.msk [vmem:[%s984_s30 + $0x18] sm:$0xff] %vm431_vm1, %v801_v15  ;;  %s710_s9 = sshll.u32 %s925_s8, 4  ;;  %v810_v53 = vclamps-f32 %v1170_v35, 1.0  ;;  %v811_v54 = vclamps-f32 %v1161_v29, 1.0  ;;  %v812_v56 = vclamps-f32 %v1178_v43, 1.0  ;;  %s1343_s9 = int_to_ptr.vmem [resolvable:$true] %s710_s9 }
 0x102   : > { %656 = vst.msk [vmem:[%s984_s30 + $0x20] sm:$0xff] %vm431_vm1, %v802_v18  ;;  %657 = vst.msk [vmem:[%s984_s30 + $0x28] sm:$0xff] %vm431_vm1, %v803_v19  ;;  %v813_v62 = vclamps-f32 %v1173_v39, 1.0  ;;  %v814_v7 = vclamps-f32 %v1196_v2, 1.0  ;;  %v815_v11 = vclamps-f32 %v1189_v58, 1.0  ;;  %v816_v16 = vclamps-f32 %v1204_v6, 1.0 }
 0x103   : > { %658 = vst.msk [vmem:[%s984_s30 + $0x30] sm:$0xff] %vm431_vm1, %v804_v22  ;;  %659 = vst.msk [vmem:[%s984_s30 + $0x38] sm:$0xff] %vm431_vm1, %v805_v23  ;;  %v817_v17 = vclamps-f32 %v1201_v5, 1.0  ;;  %s860_s10 = scalar_lea.vmem %s700_s7, 16  ;;  %s866_s11 = scalar_lea.vmem %s700_s7, 32 }
 0x104   : > { %660 = vst.msk [vmem:[%s984_s30 + $0x40] sm:$0xff] %vm431_vm1, %v806_v47  ;;  %661 = vst.msk [vmem:[%s984_s30 + $0x48] sm:$0xff] %vm431_vm1, %v807_v50  ;;  %p861_p7 = scmp.ne.s32.totalorder %s700_s7, %s860_s10  ;;  %p868_p11 = scmp.lt.s32.totalorder %s866_s11, %s860_s10 }
 0x105   : > { %662 = vst.msk [vmem:[%s984_s30 + $0x50] sm:$0xff] %vm431_vm1, %v808_v51  ;;  %663 = vst.msk [vmem:[%s984_s30 + $0x58] sm:$0xff] %vm431_vm1, %v809_v52 }
 0x106   : > { %p862_p8 = pnand %p861_p7, %p846_p6  ;;  %p869_p12 = por %p868_p11, %p867_p10 }
 0x108   : > { %p863_p9 = pneg %p862_p8 }
 0x10a   : > { %p870_p13 = pnand %p869_p12, %p863_p9 }
 0x10c   : > { %873 = shalt.err (!%p870_p13)
}
 0x10d   : > { %839 = dma.vmem_to_hbm [thread:$0]  (%p846_p6), %s700_s7, 16, %s1444_s4, [#allocation4]   ;;  %664 = vst.msk [vmem:[%s984_s30 + $0x60] sm:$0xff] %vm431_vm1, %v810_v53  ;;  %665 = vst.msk [vmem:[%s984_s30 + $0x68] sm:$0xff] %vm431_vm1, %v811_v54  ;;  %v818_v29 = vclamps-f32 %v1226_v28, 1.0  ;;  %v819_v35 = vclamps-f32 %v1217_v24, 1.0 }
 0x10e   : > { %666 = vst.msk [vmem:[%s984_s30 + $0x70] sm:$0xff] %vm431_vm1, %v812_v56  ;;  %667 = vst.msk [vmem:[%s984_s30 + $0x78] sm:$0xff] %vm431_vm1, %v813_v62  ;;  %v820_v39 = vclamps-f32 %v1234_v41, 1.0  ;;  %v821_v43 = vclamps-f32 %v1229_v33, 1.0  ;;  %s884_s14 = scalar_lea.vmem %s1343_s9, 16  ;;  %s890_s15 = scalar_lea.vmem %s1343_s9, 32 }
 0x10f   : > { %p885_p0 = scmp.ne.s32.totalorder %s1343_s9, %s884_s14  ;;  %p891_p3 = scmp.lt.s32.totalorder %s1343_s9, %s1343_s9 }
 0x110   : > { %p892_p4 = scmp.lt.s32.totalorder %s890_s15, %s884_s14 }
 0x111   : > { %p886_p1 = pnand %p885_p0, %p846_p6 }
 0x112   : > { %p893_p5 = por %p892_p4, %p891_p3 }
 0x113   : > { %p887_p2 = pneg %p886_p1 }
 0x115   : > { %p894_p7 = pnand %p893_p5, %p887_p2 }
 0x117   : > { %897 = shalt.err (!%p894_p7)
}
 0x118   : > { %841 = dma.vmem_to_hbm [thread:$0]  (%p846_p6), %s1343_s9, 16, %s1445_s5, [#allocation6]   ;;  %668 = vst.msk [vmem:[%s984_s30 + $0x80] sm:$0xff] %vm431_vm1, %v814_v7  ;;  %669 = vst.msk [vmem:[%s984_s30 + $0x88] sm:$0xff] %vm431_vm1, %v815_v11  ;;  %v822_v58 = vclamps-f32 %v1252_v63, 1.0  ;;  %v823_v2 = vclamps-f32 %v1245_v57, 1.0 }
 0x119   : > { %670 = vst.msk [vmem:[%s984_s30 + $0x90] sm:$0xff] %vm431_vm1, %v816_v16  ;;  %671 = vst.msk [vmem:[%s984_s30 + $0x98] sm:$0xff] %vm431_vm1, %v817_v17  ;;  %v824_v5 = vclamps-f32 %v1262_v13, 1.0  ;;  %v825_v6 = vclamps-f32 %v1259_v10, 1.0  ;;  %v826_v24 = vclamps-f32 %v1280_v36, 1.0  ;;  %v827_v28 = vclamps-f32 %v1277_v34, 1.0 }
 0x11a   : > { %672 = vst.msk [vmem:[%s984_s30 + $0xa0] sm:$0xff] %vm431_vm1, %v818_v29  ;;  %673 = vst.msk [vmem:[%s984_s30 + $0xa8] sm:$0xff] %vm431_vm1, %v819_v35  ;;  %v828_v33 = vclamps-f32 %v1298_v9, 1.0  ;;  %v829_v41 = vclamps-f32 %v1295_v8, 1.0 }
 0x11b   : > { %674 = vst.msk [vmem:[%s984_s30 + $0xb0] sm:$0xff] %vm431_vm1, %v820_v39  ;;  %675 = vst.msk [vmem:[%s984_s30 + $0xb8] sm:$0xff] %vm431_vm1, %v821_v43 }
 0x11c   : > { %676 = vst.msk [vmem:[%s984_s30 + $0xc0] sm:$0xff] %vm431_vm1, %v822_v58  ;;  %677 = vst.msk [vmem:[%s984_s30 + $0xc8] sm:$0xff] %vm431_vm1, %v823_v2 }
 0x11d   : > { %678 = vst.msk [vmem:[%s984_s30 + $0xd0] sm:$0xff] %vm431_vm1, %v824_v5  ;;  %679 = vst.msk [vmem:[%s984_s30 + $0xd8] sm:$0xff] %vm431_vm1, %v825_v6 }
 0x11e   : > { %680 = vst.msk [vmem:[%s984_s30 + $0xe0] sm:$0xff] %vm431_vm1, %v826_v24  ;;  %681 = vst.msk [vmem:[%s984_s30 + $0xe8] sm:$0xff] %vm431_vm1, %v827_v28 }
 0x11f   : > { %682 = vst.msk [vmem:[%s984_s30 + $0xf0] sm:$0xff] %vm431_vm1, %v828_v33  ;;  %683 = vst.msk [vmem:[%s984_s30 + $0xf8] sm:$0xff] %vm431_vm1, %v829_v41 }
 0x120   : > { %913 = dma.done.wait (%p846_p6), [#allocation4], 16  }
 0x121   : > { %915 = vsyncadd (%p846_p6), [#allocation4], 4294967280 }
 0x122   : > { %917 = dma.done.wait (%p846_p6), [#allocation6], 16  }
 0x123   : > { %919 = vsyncadd (%p846_p6), [#allocation6], 4294967280 }
 0x124 PF: > { %s20_s20 = sadd.s32 1, %s922_s20  }
 0x125   : > { %p17_p8 = scmp.ge.s32.totalorder %s20_s20, 4  }
 0x127   :  { %19 = sbr.rel (!%p17_p8) target bundleno = 5 (0x5), region = 87 }
 0x12c   :  { %735 = vsyncpa [#allocation4], 1 }
 0x12d   :  { %737 = vsyncpa [#allocation4 + $0x1], 1 }
 0x12e   :  { %738 = vsyncpa [#allocation6], 1 }

</bundles_post_ra>
